<compile_context>
chip_gen: v6e
topology: v6e:2x2x1
jax: 0.10.0
libtpu: 0.0.40
codegen_flags: <defaults>
</compile_context>

<pallas_src>
import functools

import jax
import jax.numpy as jnp
from jax.experimental import pallas as pl
from jax.experimental.pallas import tpu as pltpu

DROP_OUT = 0.1  # hp.DROP_OUT — identity in eval mode (see TODO in kernels)

_VMEM_BUDGET = 40 << 20  # conservative: leaves headroom on v7x's 64 MiB/TC


# ----------------------------------------------------------------------------
# Kernels
# ----------------------------------------------------------------------------
def _ffn_kernel_resident(x_ref, w1_ref, b1_ref, w2_ref, b2_ref, o_ref):
    # x_ref: (tm, C) f32   w1_ref: (C, H) bf16   b1_ref: (1, H) f32
    # w2_ref: (H, C) bf16  b2_ref: (1, C) f32    o_ref: (tm, C) f32
    x = x_ref[...].astype(jnp.bfloat16)
    h = jnp.dot(x, w1_ref[...], preferred_element_type=jnp.float32)
    h = jnp.maximum(h + b1_ref[...], 0.0)
    y = jnp.dot(h.astype(jnp.bfloat16), w2_ref[...],
                preferred_element_type=jnp.float32)
    # TODO(synk): nn.Dropout(DROP_OUT) is identity in eval mode; a training-mode
    # version would use pltpu.prng_seed/prng_random_bits with a per-tile offset.
    o_ref[...] = (y + b2_ref[...]).astype(o_ref.dtype)


def _ffn_kernel_htiled(x_ref, w1_ref, b1_ref, w2_ref, b2_ref, o_ref, acc_ref):
    # x_ref: (tm, C) f32      w1_ref: (C, th) bf16   b1_ref: (1, th) f32
    # w2_ref: (th, C) bf16    b2_ref: (1, C)  f32
    # o_ref: (tm, C) f32      acc_ref: (tm, C) f32 scratch (resident over H axis)
    h_idx = pl.program_id(1)

    @pl.when(h_idx == 0)
    def _():
        acc_ref[...] = jnp.zeros_like(acc_ref)

    x = x_ref[...].astype(jnp.bfloat16)
    h = jnp.dot(x, w1_ref[...], preferred_element_type=jnp.float32)
    h = jnp.maximum(h + b1_ref[...], 0.0)
    acc_ref[...] += jnp.dot(h.astype(jnp.bfloat16), w2_ref[...],
                            preferred_element_type=jnp.float32)

    @pl.when(h_idx == pl.num_programs(1) - 1)
    def _():
        # TODO(synk): eval-mode dropout == identity (see note above).
        o_ref[...] = (acc_ref[...] + b2_ref[...]).astype(o_ref.dtype)


# ----------------------------------------------------------------------------
# Tile-size selection
# ----------------------------------------------------------------------------
def _round_up(n, m):
    return ((n + m - 1) // m) * m


def _vmem_estimate(tm, C, th, resident):
    """Rough per-step VMEM footprint (bytes)."""
    f32, bf16 = 4, 2
    wbuf = 1 if resident else 2          # weight chunks: single- vs double-buffered
    est = 0
    est += 2 * tm * C * f32              # x tile (double-buffered)
    est += 2 * tm * C * f32              # out tile (double-buffered)
    est += wbuf * C * th * bf16          # W1 chunk
    est += wbuf * th * C * bf16          # W2 chunk
    est += wbuf * max(th, 128) * f32     # b1 chunk (lane-padded)
    est += max(C, 128) * f32             # b2
    est += tm * th * f32                 # f32 intermediate h
    if not resident:
        est += tm * C * f32              # accumulator scratch
    return est


def _pick_hidden_tile(C, H, tm):
    """Largest hidden tile th (divisor of H, multiple of 128) within budget."""
    th = H
    while _vmem_estimate(tm, C, th, resident=(th == H)) > _VMEM_BUDGET:
        nxt = th // 2
        if nxt < 128 or (H % nxt) != 0 or (nxt % 128) != 0:
            break
        th = nxt
    return th


# ----------------------------------------------------------------------------
# Public wrapper
# ----------------------------------------------------------------------------
@functools.partial(jax.jit, static_argnames=("tm",))
def feed_forward(x, w1, b1, w2, b2, *, tm=256):
    """x: [B, T, C] float32. Weights stored [in, out]. Returns [B, T, C]."""
    B, T, C = x.shape
    H = w1.shape[1]  # 4*C
    M = B * T
    x2d = x.reshape(M, C)

    # Big row tile to amortize per-grid-step overhead and fill the MXU, but never
    # larger than the (sublane-rounded) number of rows.
    tm = min(tm, _round_up(M, 8))
    th = _pick_hidden_tile(C, H, tm)
    n_h = H // th
    resident = n_h == 1

    # bf16 weights: halves HBM traffic / VMEM, runs the MXU at its bf16 rate.
    w1b = w1.astype(jnp.bfloat16)
    w2b = w2.astype(jnp.bfloat16)
    b1f = b1.astype(jnp.float32).reshape(1, H)
    b2f = b2.astype(jnp.float32).reshape(1, C)

    const_mode = pl.Buffered(1)  # constant-index blocks: one VMEM buffer is enough
    vmem_limit = int(min(max(2 * _vmem_estimate(tm, C, th, resident), 32 << 20),
                         100 << 20))

    if resident:
        # Common case: all weights stay resident in VMEM; 1-D grid over row tiles.
        out = pl.pallas_call(
            _ffn_kernel_resident,
            out_shape=jax.ShapeDtypeStruct((M, C), x.dtype),
            grid=(pl.cdiv(M, tm),),
            in_specs=[
                pl.BlockSpec((tm, C), lambda i: (i, 0)),                           # x rows
                pl.BlockSpec((C, H), lambda i: (0, 0), pipeline_mode=const_mode),   # W1
                pl.BlockSpec((1, H), lambda i: (0, 0), pipeline_mode=const_mode),   # b1
                pl.BlockSpec((H, C), lambda i: (0, 0), pipeline_mode=const_mode),   # W2
                pl.BlockSpec((1, C), lambda i: (0, 0), pipeline_mode=const_mode),   # b2
            ],
            out_specs=pl.BlockSpec((tm, C), lambda i: (i, 0)),
            compiler_params=pltpu.CompilerParams(
                dimension_semantics=("parallel",),
                vmem_limit_bytes=vmem_limit),
        )(x2d, w1b, b1f, w2b, b2f)
    else:
        # Large C/H: tile the hidden dim and accumulate the second matmul in f32.
        out = pl.pallas_call(
            _ffn_kernel_htiled,
            out_shape=jax.ShapeDtypeStruct((M, C), x.dtype),
            grid=(pl.cdiv(M, tm), n_h),
            in_specs=[
                pl.BlockSpec((tm, C), lambda i, h: (i, 0)),                             # x rows
                pl.BlockSpec((C, th), lambda i, h: (0, h)),                              # W1 chunk
                pl.BlockSpec((1, th), lambda i, h: (0, h)),                              # b1 chunk
                pl.BlockSpec((th, C), lambda i, h: (h, 0)),                              # W2 chunk
                pl.BlockSpec((1, C), lambda i, h: (0, 0), pipeline_mode=const_mode),     # b2
            ],
            out_specs=pl.BlockSpec((tm, C), lambda i, h: (i, 0)),
            scratch_shapes=[pltpu.VMEM((tm, C), jnp.float32)],
            compiler_params=pltpu.CompilerParams(
                dimension_semantics=("parallel", "arbitrary"),
                vmem_limit_bytes=vmem_limit),
        )(x2d, w1b, b1f, w2b, b2f)
    return out.reshape(B, T, C)


def init_params(key, n_embed):
    """Deterministic init matching nn.Linear's U(-1/sqrt(fan_in), 1/sqrt(fan_in))."""
    k1, k2, k3, k4 = jax.random.split(key, 4)
    hidden = 4 * n_embed
    bound1 = 1.0 / (n_embed ** 0.5)
    bound2 = 1.0 / (hidden ** 0.5)
    # stored as [in, out] (transposed vs. PyTorch's [out, in])
    w1 = jax.random.uniform(k1, (n_embed, hidden), jnp.float32, -bound1, bound1)
    b1 = jax.random.uniform(k2, (1, hidden), jnp.float32, -bound1, bound1)
    w2 = jax.random.uniform(k3, (hidden, n_embed), jnp.float32, -bound2, bound2)
    b2 = jax.random.uniform(k4, (1, n_embed), jnp.float32, -bound2, bound2)
    return w1, b1, w2, b2


if __name__ == "__main__":
    B, T, n_embed = 2, 8, 32
    key = jax.random.PRNGKey(0)
    kx, kp = jax.random.split(key)
    x = jax.random.normal(kx, (B, T, n_embed), jnp.float32)
    w1, b1, w2, b2 = init_params(kp, n_embed)

    y = feed_forward(x, w1, b1, w2, b2)
    jax.block_until_ready(y)

    # reference check (eval-mode dropout == identity); tolerance loosened because
    # the kernel runs its matmuls in bf16 with f32 accumulation.
    ref = jnp.maximum(x.reshape(-1, n_embed) @ w1 + b1, 0.0) @ w2 + b2
    ref = ref.reshape(B, T, n_embed)
    assert jnp.allclose(y, ref, atol=5e-2, rtol=5e-2), "mismatch vs reference"
    print("KERNEL_OK")
</pallas_src>

<mosaic_0001>
module attributes {stable_mosaic.version = 11 : i64} {
  func.func @_ffn_kernel_resident(%arg0: i32, %arg1: memref<16x32xf32, #tpu.memory_space<vmem>>, %arg2: memref<32x128xbf16, #tpu.memory_space<vmem>>, %arg3: memref<1x128xf32, #tpu.memory_space<vmem>>, %arg4: memref<128x32xbf16, #tpu.memory_space<vmem>>, %arg5: memref<1x32xf32, #tpu.memory_space<vmem>>, %arg6: memref<16x32xf32, #tpu.memory_space<vmem>>) attributes {dimension_semantics = [#tpu.dimension_semantics<parallel>], iteration_bounds = array<i64: 1>, scalar_prefetch = 0 : i64, scratch_operands = 0 : i64, tpu.core_type = #tpu.core_type<tc>, window_params = [{transform_indices = @transform_0, window_bounds = array<i64: 16, 32>}, {pipeline_mode = #tpu.pipeline_mode<synchronous>, transform_indices = @transform_1, window_bounds = array<i64: 32, 128>}, {pipeline_mode = #tpu.pipeline_mode<synchronous>, transform_indices = @transform_2, window_bounds = array<i64: 1, 128>}, {pipeline_mode = #tpu.pipeline_mode<synchronous>, transform_indices = @transform_3, window_bounds = array<i64: 128, 32>}, {pipeline_mode = #tpu.pipeline_mode<synchronous>, transform_indices = @transform_4, window_bounds = array<i64: 1, 32>}, {transform_indices = @transform_5, window_bounds = array<i64: 16, 32>}]} {
    %c0 = arith.constant 0 : index
    %c0_0 = arith.constant 0 : index
    %0 = vector.load %arg1[%c0, %c0_0] : memref<16x32xf32, #tpu.memory_space<vmem>>, vector<16x32xf32>
    %1 = arith.truncf %0 : vector<16x32xf32> to vector<16x32xbf16>
    %c0_1 = arith.constant 0 : index
    %c0_2 = arith.constant 0 : index
    %2 = vector.load %arg2[%c0_1, %c0_2] : memref<32x128xbf16, #tpu.memory_space<vmem>>, vector<32x128xbf16>
    %cst = arith.constant dense<0.000000e+00> : vector<16x128xf32>
    %3 = tpu.matmul %1, %2, %cst {dimension_numbers = #tpu.dot_dimension_numbers<[1], [0], [0], [1], [0, 0, 1, 1], [], []>} : vector<16x32xbf16>, vector<32x128xbf16>, vector<16x128xf32> -> vector<16x128xf32>
    %c0_3 = arith.constant 0 : index
    %c0_4 = arith.constant 0 : index
    %4 = vector.load %arg3[%c0_3, %c0_4] : memref<1x128xf32, #tpu.memory_space<vmem>>, vector<1x128xf32>
    %5 = vector.broadcast %4 : vector<1x128xf32> to vector<16x128xf32>
    %6 = arith.addf %3, %5 : vector<16x128xf32>
    %cst_5 = arith.constant 0.000000e+00 : f32
    %7 = vector.broadcast %cst_5 : f32 to vector<16x128xf32>
    %8 = arith.maximumf %6, %7 : vector<16x128xf32>
    %9 = arith.truncf %8 : vector<16x128xf32> to vector<16x128xbf16>
    %c0_6 = arith.constant 0 : index
    %c0_7 = arith.constant 0 : index
    %10 = vector.load %arg4[%c0_6, %c0_7] : memref<128x32xbf16, #tpu.memory_space<vmem>>, vector<128x32xbf16>
    %cst_8 = arith.constant dense<0.000000e+00> : vector<16x32xf32>
    %11 = tpu.matmul %9, %10, %cst_8 {dimension_numbers = #tpu.dot_dimension_numbers<[1], [0], [0], [1], [0, 0, 1, 1], [], []>} : vector<16x128xbf16>, vector<128x32xbf16>, vector<16x32xf32> -> vector<16x32xf32>
    %c0_9 = arith.constant 0 : index
    %c0_10 = arith.constant 0 : index
    %12 = vector.load %arg5[%c0_9, %c0_10] : memref<1x32xf32, #tpu.memory_space<vmem>>, vector<1x32xf32>
    %13 = vector.broadcast %12 : vector<1x32xf32> to vector<16x32xf32>
    %14 = arith.addf %11, %13 : vector<16x32xf32>
    %c0_11 = arith.constant 0 : index
    %c0_12 = arith.constant 0 : index
    %15 = vector.load %arg6[%c0_11, %c0_12] : memref<16x32xf32, #tpu.memory_space<vmem>>, vector<16x32xf32>
    tpu.vector_store %arg6[%c0_11, %c0_12], %14 {strides = array<i32>} : memref<16x32xf32, #tpu.memory_space<vmem>>, vector<16x32xf32>,
    return
  }
  func.func @transform_0(%arg0: i32) -> (i32, i32) {
    %c0_i32 = arith.constant 0 : i32
    %c0_i32_0 = arith.constant 0 : i32
    return %arg0, %c0_i32 : i32, i32
  }
  func.func @transform_1(%arg0: i32) -> (i32, i32) {
    %c0_i32 = arith.constant 0 : i32
    %c0_i32_0 = arith.constant 0 : i32
    %c0_i32_1 = arith.constant 0 : i32
    return %c0_i32, %c0_i32_0 : i32, i32
  }
  func.func @transform_2(%arg0: i32) -> (i32, i32) {
    %c0_i32 = arith.constant 0 : i32
    %c0_i32_0 = arith.constant 0 : i32
    %c0_i32_1 = arith.constant 0 : i32
    return %c0_i32, %c0_i32_0 : i32, i32
  }
  func.func @transform_3(%arg0: i32) -> (i32, i32) {
    %c0_i32 = arith.constant 0 : i32
    %c0_i32_0 = arith.constant 0 : i32
    %c0_i32_1 = arith.constant 0 : i32
    return %c0_i32, %c0_i32_0 : i32, i32
  }
  func.func @transform_4(%arg0: i32) -> (i32, i32) {
    %c0_i32 = arith.constant 0 : i32
    %c0_i32_0 = arith.constant 0 : i32
    %c0_i32_1 = arith.constant 0 : i32
    return %c0_i32, %c0_i32_0 : i32, i32
  }
  func.func @transform_5(%arg0: i32) -> (i32, i32) {
    %c0_i32 = arith.constant 0 : i32
    %c0_i32_0 = arith.constant 0 : i32
    return %arg0, %c0_i32 : i32, i32
  }
}

</mosaic_0001>

<bundles_post_ra>
// kernel: feed_forward.1
= control target key start
LH: loop header
LB: loop body
LE: loop exit
PB: predicated region body
PF: predicated region fallthrough
CT: control target
= control target key end

     0   :  { %v316_v1 = vmov 0.0   ;;  %vm317_vm0 = vmmov 0   ;;  %vm48_vm1 = vcmask 261120   ;;  %s399_s0 = inlined_call_operand.vmem [shape: f32[16,32], index: 0, kind: input, shape index: {}]   ;;  %s400_s1 = inlined_call_operand.vmem [shape: bf16[32,128], index: 1, kind: input, shape index: {}]   ;;  %s401_s2 = inlined_call_operand.vmem [shape: f32[1,128], index: 2, kind: input, shape index: {}]   ;;  %s402_s3 = inlined_call_operand.vmem [shape: bf16[128,32], index: 3, kind: input, shape index: {}]   ;;  %s403_s4 = inlined_call_operand.vmem [shape: f32[1,32], index: 4, kind: input, shape index: {}]   ;;  %s404_s5 = inlined_call_operand.hbm [shape: f32[16,32], index: 5, kind: output, shape index: {}]  }
   0x1   :  { %v284_v0 = vld [vmem:[%s400_s1 + $0x8] sm:$0xff]   ;;  %251 = vmatprep.subr.bf16.mxu0 %v316_v1  ;;  %v285_v2 = vld [vmem:[%s400_s1] sm:$0xff]   ;;  %259 = vmatprep.subr.bf16.mxu1 %v316_v1  ;;  %v286_v5 = vld [vmem:[%s402_s3 + $0x38] sm:$0xff]  }
   0x2   :  { %252 = vmatpush3.bf16.msra.mxu0 %v284_v0  ;;  %255 = vmatprep.mubr.msk.bf16.mxu0 %vm317_vm0, %v316_v1  ;;  %v22_v3 = vld [vmem:[%s399_s0] sm:$0xff]  ;;  %v23_v4 = vld [vmem:[%s399_s0 + $0x8] sm:$0xff]  ;;  %v287_v7 = vld [vmem:[%s402_s3 + $0x30] sm:$0xff]  }
   0x3   :  { %253 = vmatprep.subr.bf16.mxu0 %v316_v1  ;;  %275 = vmatprep.mubr.msk.bf16.mxu1 %vm317_vm0, %v316_v1  ;;  %v24_v6 = vpack.c.bf16 %v23_v4, %v22_v3  ;;  %v288_v8 = vld [vmem:[%s402_s3 + $0x28] sm:$0xff]  }
   0x4   :  { %260 = vmatpush3.bf16.msra.mxu1 %v286_v5 }
   0x5   :  { %261 = vmatprep.subr.bf16.mxu1 %v316_v1 }
   0x6   :  { %254 = vmatpush3.bf16.msra.mxu0 %v285_v2 }
   0x8   :  { %262 = vmatpush3.bf16.msra.mxu1 %v287_v7 }
   0x9   :  { %256 = vmatmul.mubr.msk.bf16.vlgmr.msra.gmra.mxu0 %vm48_vm1, %v24_v6  ;;  %263 = vmatprep.subr.bf16.mxu1 %v316_v1 }
   0xa   :  { %10 = vsyncpa [#allocation3], 0  ;;  %v289_v9 = vld [vmem:[%s402_s3 + $0x20] sm:$0xff]   ;;  %v290_v10 = vld [vmem:[%s402_s3 + $0x18] sm:$0xff]  }
   0xb   :  { %v291_v11 = vld [vmem:[%s402_s3 + $0x10] sm:$0xff]   ;;  %v292_v12 = vld [vmem:[%s402_s3 + $0x8] sm:$0xff]   ;;  %v293_v13 = vld [vmem:[%s402_s3] sm:$0xff]   ;;  %s318_s3 = smov [#allocation2]  }
   0xc   :  { %264 = vmatpush3.bf16.msra.mxu1 %v288_v8  ;;  %v226_v14 = vld [vmem:[%s401_s2] ss:$0 sm:$0xff]  ;;  %s215_s19 = sshll.u32 %s318_s3, 4  ;;  %s216_s19 = int_to_ptr.vmem [resolvable:$true] %s215_s19 }
   0xd   :  { %265 = vmatprep.subr.bf16.mxu1 %v316_v1  ;;  %v230_v24 = vld [vmem:[%s403_s4] ss:$0 sm:$0xff]  ;;  %s294_s2 = scalar_lea.vmem %s216_s19, 256  ;;  %p299_p1 = scmp.lt.s32.totalorder %s216_s19, %s216_s19 }
   0xe   :  { %p295_p0 = scmp.ne.s32.totalorder %s216_s19, %s294_s2  ;;  %p300_p2 = scmp.lt.s32.totalorder %s294_s2, %s294_s2 }
  0x10   :  { %266 = vmatpush3.bf16.msra.mxu1 %v289_v9  ;;  %p301_p3 = por %p300_p2, %p299_p1 }
  0x11   :  { %267 = vmatprep.subr.bf16.mxu1 %v316_v1 }
  0x12   :  { %p302_p4 = pnand %p301_p3, %p295_p0 }
  0x14   :  { %268 = vmatpush3.bf16.msra.mxu1 %v290_v10 }
  0x15   :  { %269 = vmatprep.subr.bf16.mxu1 %v316_v1 }
  0x18   :  { %270 = vmatpush3.bf16.msra.mxu1 %v291_v11 }
  0x19   :  { %271 = vmatprep.subr.bf16.mxu1 %v316_v1 }
  0x1c   :  { %272 = vmatpush3.bf16.msra.mxu1 %v292_v12 }
  0x1d   :  { %273 = vmatprep.subr.bf16.mxu1 %v316_v1 }
  0x20   :  { %274 = vmatpush3.bf16.msra.mxu1 %v293_v13 }
  0xc9   :  { %v86_v15 = vpop.f32.mrf.mxu0 }
  0xca   :  { %v87_v17 = vadd.f32 %v226_v14, %v86_v15 }
  0xcb   :  { %v257_v16 = vpop.f32.mrf.mxu0 }
  0xcc   :  { %v93_v21 = vmax.f32 %v87_v17, 0.0 }
  0xcd   :  { %v89_v18 = vpop.f32.mrf.mxu0 }
  0xce   :  { %v90_v19 = vadd.f32 %v226_v14, %v89_v18 }
  0xcf   :  { %v258_v20 = vpop.f32.mrf.mxu0 }
  0xd0   :  { %v94_v22 = vmax.f32 %v90_v19, 0.0 }
  0xd2   :  { %v95_v23 = vpack.c.bf16 %v94_v22, %v93_v21 }
  0xd4   :  { %276 = vmatmul.mubr.bf16.vlgmr.msra.gmra.mxu1 %v95_v23 }
 0x194   :  { %v201_v25 = vpop.f32.mrf.mxu1 }
 0x195   :  { %v202_v26 = vadd.f32 %v230_v24, %v201_v25 }
 0x196   :  { %v277_v27 = vpop.f32.mrf.mxu1 }
 0x197   :  { %208 = vst.msk [vmem:[#allocation2] sm:$0xff] %vm48_vm1, %v202_v26 }
 0x198   :  { %v204_v28 = vpop.f32.mrf.mxu1 }
 0x199   :  { %v205_v29 = vadd.f32 %v230_v24, %v204_v28 }
 0x19a   :  { %v278_v30 = vpop.f32.mrf.mxu1 }
 0x19b   :  { %209 = vst.msk [vmem:[#allocation2 + $0x8] sm:$0xff] %vm48_vm1, %v205_v29 }
 0x19c   :  { %305 = shalt.err (!%p302_p4)
}
 0x19d   :  { %s319_s4 = smov 128   ;;  %s320_s20 = smov 8  }
 0x19e   :  { %221 = dma.vmem_to_hbm [thread:$0]  %s216_s19, 256, %s404_s5, [#allocation3], %s319_s4, %s319_s4, %s320_s20  }
 0x19f   :  { %314 = dma.done.wait [#allocation3], 256  }
 0x1a0   :  { %315 = vsyncadd [#allocation3], 4294967040 }
 0x1a1   :  { %225 = vsyncpa [#allocation3], 1 }

</bundles_post_ra>
